<compile_context>
chip_gen: v5e
topology: v5e:2x2
jax: 0.10.0
libtpu: 0.0.40
codegen_flags: <defaults>
</compile_context>

<pallas_src>
import jax
import jax.numpy as jnp
from jax.experimental import pallas as pl
from jax.experimental.pallas import tpu as pltpu


def _round_up(x, m):
    return ((x + m - 1) // m) * m


def _qnet_kernel(x_ref, w1_ref, b1_ref, w2_ref, b2_ref, w3_ref, b3_ref, out_ref):
    # Layer 1: bf16 MXU matmul, f32 accumulation; bias + ReLU in f32 on the VPU.
    x = x_ref[...].astype(jnp.bfloat16)                       # [TB, D]
    h = jnp.dot(x, w1_ref[...], preferred_element_type=jnp.float32)
    h = jnp.maximum(h + b1_ref[...], 0.0)                     # [TB, H] f32

    # Layer 2: same pattern.
    h = jnp.dot(h.astype(jnp.bfloat16), w2_ref[...],
                preferred_element_type=jnp.float32)
    h = jnp.maximum(h + b2_ref[...], 0.0)                     # [TB, H] f32

    # Layer 3 (H -> 1): VPU multiply + lane reduction instead of an N=1 MXU
    # matmul (which would use 1/128 of the MXU and force masked stores anyway).
    q = jnp.sum(h * w3_ref[...], axis=-1, keepdims=True) + b3_ref[0, 0]
    out_ref[...] = q.astype(out_ref.dtype)                    # [TB, 1]


def qnetwork_forward(action_state, params, *, tb=256):
    """action_state: [batch, nobs + nactions] float32.
    params: w1 [D,H] bf16, b1 [1,H] f32, w2 [H,H] bf16, b2 [1,H] f32,
            w3 [1,H] f32 (row vector), b3 [1,1] f32.
    Returns q_value: [batch, 1] float32."""
    B, D = action_state.shape
    H = params["w1"].shape[1]

    # Batch tile: multiple of 8 (sublane), capped at `tb`; pad batch so the
    # tile divides it exactly (padded rows are sliced off after the call).
    TB = _round_up(min(tb, _round_up(B, 8)), 8)
    Bp = _round_up(B, TB)
    if Bp != B:
        action_state = jnp.pad(action_state, ((0, Bp - B), (0, 0)))
    nb = Bp // TB

    cost = pl.CostEstimate(
        flops=2 * Bp * (D * H + H * H + H),
        transcendentals=0,
        bytes_accessed=(Bp * D * 4 + Bp * 4            # input + output
                        + (D * H + H * H) * 2          # bf16 weights
                        + (3 * H + 1) * 4),            # biases + w3 row
    )

    out = pl.pallas_call(
        _qnet_kernel,
        out_shape=jax.ShapeDtypeStruct((Bp, 1), jnp.float32),
        grid=(nb,),
        in_specs=[
            pl.BlockSpec((TB, D), lambda i: (i, 0)),            # batch-tiled input
            pl.BlockSpec((D, H), lambda i: (0, 0)),             # weights stay
            pl.BlockSpec((1, H), lambda i: (0, 0)),             #  VMEM-resident
            pl.BlockSpec((H, H), lambda i: (0, 0)),             #  across grid
            pl.BlockSpec((1, H), lambda i: (0, 0)),
            pl.BlockSpec((1, H), lambda i: (0, 0)),             # w3 row vector
            pl.BlockSpec(memory_space=pltpu.MemorySpace.SMEM),  # b3 scalar
        ],
        out_specs=pl.BlockSpec((TB, 1), lambda i: (i, 0)),
        compiler_params=pltpu.CompilerParams(
            dimension_semantics=("parallel",),   # shard batch tiles across TCs (v7x)
        ),
        cost_estimate=cost,
    )(action_state,
      params["w1"], params["b1"],
      params["w2"], params["b2"],
      params["w3"], params["b3"])

    return out[:B]


def init_params(key, in_dim, hidden):
    """Mirrors PyTorch Linear default init (uniform +-1/sqrt(fan_in)).
    Hidden weights stored [in, out] in bf16 for the MXU; w3 stored as a [1, H]
    f32 row (consumed by the VPU reduction); biases f32."""
    k1, k2, k3, k4, k5, k6 = jax.random.split(key, 6)

    def lin(kw, kb, fan_in, fan_out):
        bound = float(fan_in) ** -0.5
        w = jax.random.uniform(kw, (fan_in, fan_out), jnp.float32, -bound, bound)
        b = jax.random.uniform(kb, (1, fan_out), jnp.float32, -bound, bound)
        return w, b

    w1, b1 = lin(k1, k2, in_dim, hidden)
    w2, b2 = lin(k3, k4, hidden, hidden)
    w3, b3 = lin(k5, k6, hidden, 1)
    return {
        "w1": w1.astype(jnp.bfloat16), "b1": b1,
        "w2": w2.astype(jnp.bfloat16), "b2": b2,
        "w3": w3.T,            # [1, H] row for the final VPU reduction
        "b3": b3,              # [1, 1]
    }


def qnetwork_reference(action_state, params):
    """Pure-JAX reference computing the same quantization/op sequence."""
    h = jnp.dot(action_state.astype(jnp.bfloat16), params["w1"],
                preferred_element_type=jnp.float32) + params["b1"]
    h = jnp.maximum(h, 0.0)
    h = jnp.dot(h.astype(jnp.bfloat16), params["w2"],
                preferred_element_type=jnp.float32) + params["b2"]
    h = jnp.maximum(h, 0.0)
    return jnp.sum(h * params["w3"], axis=-1, keepdims=True) + params["b3"][0, 0]


# TODO(synk): optimizer (optim.Adam) is training-side state, not part of forward.

if __name__ == "__main__":
    # Small shapes consistent with the module: nobs=12, nactions=4 -> in_dim=16,
    # hidden_layer_size=32. batch=48 with tb=32 exercises multi-tile grid + the
    # batch-padding path (48 -> 64 -> slice back to 48).
    nobs, nactions, hidden, batch = 12, 4, 32, 48
    in_dim = nobs + nactions

    key = jax.random.PRNGKey(0)
    k_params, k_x = jax.random.split(key)
    params = init_params(k_params, in_dim, hidden)
    action_state = jax.random.normal(k_x, (batch, in_dim), jnp.float32)

    q = qnetwork_forward(action_state, params, tb=32)
    q = jax.block_until_ready(q)

    q_ref = qnetwork_reference(action_state, params)
    assert q.shape == (batch, 1), q.shape
    assert jnp.allclose(q, q_ref, atol=1e-3, rtol=1e-3), \
        float(jnp.max(jnp.abs(q - q_ref)))

    print("KERNEL_OK")
</pallas_src>

<mosaic_0001>
module attributes {stable_mosaic.version = 11 : i64} {
  func.func @_qnet_kernel(%arg0: i32, %arg1: memref<32x16xf32, #tpu.memory_space<vmem>>, %arg2: memref<16x32xbf16, #tpu.memory_space<vmem>>, %arg3: memref<1x32xf32, #tpu.memory_space<vmem>>, %arg4: memref<32x32xbf16, #tpu.memory_space<vmem>>, %arg5: memref<1x32xf32, #tpu.memory_space<vmem>>, %arg6: memref<1x32xf32, #tpu.memory_space<vmem>>, %arg7: memref<1x1xf32, #tpu.memory_space<smem>>, %arg8: memref<32x1xf32, #tpu.memory_space<vmem>>) attributes {dimension_semantics = [#tpu.dimension_semantics<parallel>], iteration_bounds = array<i64: 2>, scalar_prefetch = 0 : i64, scratch_operands = 0 : i64, tpu.core_type = #tpu.core_type<tc>, window_params = [{transform_indices = @transform_0, window_bounds = array<i64: 32, 16>}, {pipeline_mode = #tpu.pipeline_mode<synchronous>, transform_indices = @transform_1, window_bounds = array<i64: 16, 32>}, {pipeline_mode = #tpu.pipeline_mode<synchronous>, transform_indices = @transform_2, window_bounds = array<i64: 1, 32>}, {pipeline_mode = #tpu.pipeline_mode<synchronous>, transform_indices = @transform_3, window_bounds = array<i64: 32, 32>}, {pipeline_mode = #tpu.pipeline_mode<synchronous>, transform_indices = @transform_4, window_bounds = array<i64: 1, 32>}, {pipeline_mode = #tpu.pipeline_mode<synchronous>, transform_indices = @transform_5, window_bounds = array<i64: 1, 32>}, {transform_indices = @transform_6, window_bounds = array<i64: 1, 1>}, {transform_indices = @transform_7, window_bounds = array<i64: 32, 1>}]} {
    %c0 = arith.constant 0 : index
    %c0_0 = arith.constant 0 : index
    %0 = vector.load %arg1[%c0, %c0_0] : memref<32x16xf32, #tpu.memory_space<vmem>>, vector<32x16xf32>
    %1 = arith.truncf %0 : vector<32x16xf32> to vector<32x16xbf16>
    %c0_1 = arith.constant 0 : index
    %c0_2 = arith.constant 0 : index
    %2 = vector.load %arg2[%c0_1, %c0_2] : memref<16x32xbf16, #tpu.memory_space<vmem>>, vector<16x32xbf16>
    %cst = arith.constant dense<0.000000e+00> : vector<32x32xf32>
    %3 = tpu.matmul %1, %2, %cst {dimension_numbers = #tpu.dot_dimension_numbers<[1], [0], [0], [1], [0, 0, 1, 1], [], []>} : vector<32x16xbf16>, vector<16x32xbf16>, vector<32x32xf32> -> vector<32x32xf32>
    %c0_3 = arith.constant 0 : index
    %c0_4 = arith.constant 0 : index
    %4 = vector.load %arg3[%c0_3, %c0_4] : memref<1x32xf32, #tpu.memory_space<vmem>>, vector<1x32xf32>
    %5 = vector.broadcast %4 : vector<1x32xf32> to vector<32x32xf32>
    %6 = arith.addf %3, %5 : vector<32x32xf32>
    %cst_5 = arith.constant 0.000000e+00 : f32
    %7 = vector.broadcast %cst_5 : f32 to vector<32x32xf32>
    %8 = arith.maximumf %6, %7 : vector<32x32xf32>
    %9 = arith.truncf %8 : vector<32x32xf32> to vector<32x32xbf16>
    %c0_6 = arith.constant 0 : index
    %c0_7 = arith.constant 0 : index
    %10 = vector.load %arg4[%c0_6, %c0_7] : memref<32x32xbf16, #tpu.memory_space<vmem>>, vector<32x32xbf16>
    %cst_8 = arith.constant dense<0.000000e+00> : vector<32x32xf32>
    %11 = tpu.matmul %9, %10, %cst_8 {dimension_numbers = #tpu.dot_dimension_numbers<[1], [0], [0], [1], [0, 0, 1, 1], [], []>} : vector<32x32xbf16>, vector<32x32xbf16>, vector<32x32xf32> -> vector<32x32xf32>
    %c0_9 = arith.constant 0 : index
    %c0_10 = arith.constant 0 : index
    %12 = vector.load %arg5[%c0_9, %c0_10] : memref<1x32xf32, #tpu.memory_space<vmem>>, vector<1x32xf32>
    %13 = vector.broadcast %12 : vector<1x32xf32> to vector<32x32xf32>
    %14 = arith.addf %11, %13 : vector<32x32xf32>
    %cst_11 = arith.constant 0.000000e+00 : f32
    %15 = vector.broadcast %cst_11 : f32 to vector<32x32xf32>
    %16 = arith.maximumf %14, %15 : vector<32x32xf32>
    %c0_12 = arith.constant 0 : index
    %c0_13 = arith.constant 0 : index
    %17 = vector.load %arg6[%c0_12, %c0_13] : memref<1x32xf32, #tpu.memory_space<vmem>>, vector<1x32xf32>
    %18 = vector.broadcast %17 : vector<1x32xf32> to vector<32x32xf32>
    %19 = arith.mulf %16, %18 : vector<32x32xf32>
    %cst_14 = arith.constant dense<0.000000e+00> : vector<32xf32>
    %20 = vector.multi_reduction <add>, %19, %cst_14 [1] : vector<32x32xf32> to vector<32xf32>
    %21 = vector.shape_cast %20 : vector<32xf32> to vector<32x1xf32>
    %c0_15 = arith.constant 0 : index
    %c0_16 = arith.constant 0 : index
    %22 = memref.load %arg7[%c0_15, %c0_16] : memref<1x1xf32, #tpu.memory_space<smem>>
    %23 = vector.broadcast %22 : f32 to vector<32x1xf32>
    %24 = arith.addf %21, %23 : vector<32x1xf32>
    %c0_17 = arith.constant 0 : index
    %c0_18 = arith.constant 0 : index
    %25 = vector.load %arg8[%c0_17, %c0_18] : memref<32x1xf32, #tpu.memory_space<vmem>>, vector<32x1xf32>
    tpu.vector_store %arg8[%c0_17, %c0_18], %24 {strides = array<i32>} : memref<32x1xf32, #tpu.memory_space<vmem>>, vector<32x1xf32>,
    return
  }
  func.func @transform_0(%arg0: i32) -> (i32, i32) {
    %c0_i32 = arith.constant 0 : i32
    %c0_i32_0 = arith.constant 0 : i32
    return %arg0, %c0_i32 : i32, i32
  }
  func.func @transform_1(%arg0: i32) -> (i32, i32) {
    %c0_i32 = arith.constant 0 : i32
    %c0_i32_0 = arith.constant 0 : i32
    %c0_i32_1 = arith.constant 0 : i32
    return %c0_i32, %c0_i32_0 : i32, i32
  }
  func.func @transform_2(%arg0: i32) -> (i32, i32) {
    %c0_i32 = arith.constant 0 : i32
    %c0_i32_0 = arith.constant 0 : i32
    %c0_i32_1 = arith.constant 0 : i32
    return %c0_i32, %c0_i32_0 : i32, i32
  }
  func.func @transform_3(%arg0: i32) -> (i32, i32) {
    %c0_i32 = arith.constant 0 : i32
    %c0_i32_0 = arith.constant 0 : i32
    %c0_i32_1 = arith.constant 0 : i32
    return %c0_i32, %c0_i32_0 : i32, i32
  }
  func.func @transform_4(%arg0: i32) -> (i32, i32) {
    %c0_i32 = arith.constant 0 : i32
    %c0_i32_0 = arith.constant 0 : i32
    %c0_i32_1 = arith.constant 0 : i32
    return %c0_i32, %c0_i32_0 : i32, i32
  }
  func.func @transform_5(%arg0: i32) -> (i32, i32) {
    %c0_i32 = arith.constant 0 : i32
    %c0_i32_0 = arith.constant 0 : i32
    %c0_i32_1 = arith.constant 0 : i32
    return %c0_i32, %c0_i32_0 : i32, i32
  }
  func.func @transform_6(%arg0: i32) -> (i32, i32) {
    %c0_i32 = arith.constant 0 : i32
    %c0_i32_0 = arith.constant 0 : i32
    %c0_i32_1 = arith.constant 0 : i32
    return %c0_i32, %c0_i32_0 : i32, i32
  }
  func.func @transform_7(%arg0: i32) -> (i32, i32) {
    %c0_i32 = arith.constant 0 : i32
    %c0_i32_0 = arith.constant 0 : i32
    return %arg0, %c0_i32 : i32, i32
  }
}

</mosaic_0001>

<bundles_post_ra>
// kernel: tpu_custom_call.1
= control target key start
LH: loop header
LB: loop body
LE: loop exit
PB: predicated region body
PF: predicated region fallthrough
CT: control target
= control target key end

     0   :  { %s566_s26 = smov 0   ;;  %s614_s0 = inlined_call_operand.vmem [shape: f32[64,16], index: 0, kind: input, shape index: {}]   ;;  %s615_s1 = inlined_call_operand.vmem [shape: bf16[16,32], index: 1, kind: input, shape index: {}]   ;;  %s616_s2 = inlined_call_operand.vmem [shape: f32[1,32], index: 2, kind: input, shape index: {}]   ;;  %s617_s3 = inlined_call_operand.vmem [shape: bf16[32,32], index: 3, kind: input, shape index: {}]   ;;  %s618_s4 = inlined_call_operand.vmem [shape: f32[1,32], index: 4, kind: input, shape index: {}]   ;;  %s619_s5 = inlined_call_operand.vmem [shape: f32[1,32], index: 5, kind: input, shape index: {}]   ;;  %s620_s6 = inlined_call_operand.<no memory space> [shape: f32[1,1], index: 6, kind: input, shape index: {}]   ;;  %s621_s7 = inlined_call_operand.vmem [shape: f32[64,1], index: 7, kind: output, shape index: {}]  }
   0x1   :  { %12 = sst [smem:[#allocation2]] %s620_s6 }
   0x2 LB: > { %s471_s27 = sadd.s32 4294967295, %s521_s26   ;;  %p475_p0 = scmp.ge.s32.totalorder %s521_s26, 1  ;;  %s521_s26 = sphi %s566_s26, %s18_s26  }
   0x3   : > { %p239_p1 = scmp.lt.s32.totalorder %s521_s26, 3 }
   0x5   : > { %p240_p2 = pnand %p475_p0, %p239_p1 }
   0x6   : > { %s476_s6 = sshll.u32 (!%p240_p2), %s471_s27, 2  ;;  %s404_s21 = sld [smem:[#allocation2]] (!%p240_p2) }
   0x7   : > { %243 = sbr.rel (%p240_p2) target bundleno = 431 (0x1af), region = 48  ;;  %p272_p3 = scmp.lt.s32.totalorder (!%p240_p2), %s476_s6, 7 }
   0xc   : > { %v498_v0 = vld [vmem:[%s615_s1] sm:$0xff]  ;;  %s623_s6 = smov (!%p272_p3, %s476_s6), 7  ;;  %vm302_vm0 = vcmask 130048   ;;  %v500_v7 = vld [vmem:[%s617_s3 + $0x8] sm:$0xff]  ;;  %vm354_vm1 = vcmask 261120   ;;  %v405_v46 = vstv %s404_s21  ;;  %vm410_vm2 = vcmask 7168  }
   0xd   : > { %316 = vmatpush.bf16.msra.mxu0 %v498_v0  ;;  %501 = vmatpush.bf16.msra.mxu3 %v498_v0  ;;  %s477_s30 = sshll.u32 %s623_s6, 3  ;;  %v499_v8 = vld [vmem:[%s617_s3] sm:$0xff] }
   0xe   : > { %s275_s10 = scalar_lea.vmem %s614_s0, %s477_s30  ;;  %367 = vmatpush.bf16.msra.mxu1 %v500_v7  ;;  %502 = vmatpush.bf16.msra.mxu2 %v500_v7  ;;  %v512_v10 = vld [vmem:[%s616_s2] ss:$0 sm:$0xff]  ;;  %s281_s24 = scalar_lea.vmem %s621_s7, %s477_s30 }
   0xf   : > { %v284_v1 = vld [vmem:[%s275_s10] sm:$0xff]  ;;  %v285_v2 = vld [vmem:[%s275_s10 + $0x8] sm:$0xff]  ;;  %v286_v3 = vld [vmem:[%s275_s10 + $0x10] sm:$0xff] }
  0x10   : > { %v288_v4 = vpack.c.bf16 %v285_v2, %v284_v1  ;;  %v287_v5 = vld [vmem:[%s275_s10 + $0x18] sm:$0xff]  ;;  %v513_v24 = vld [vmem:[%s618_s4] ss:$0 sm:$0xff] }
  0x11   : > { %v289_v6 = vpack.c.bf16 %v287_v5, %v286_v3  ;;  %v514_v27 = vld [vmem:[%s619_s5] ss:$0 sm:$0xff] }
  0x12   : > { %484 = vmatmul.msk.bf16.vlgmr.msra.gmra.mxu0 %vm302_vm0, %v288_v4  ;;  %368 = vmatpush.bf16.msra.mxu1 %v499_v8 }
  0x13   : > { %485 = vmatmul.msk.bf16.vlgmr.msra.gmra.mxu3 %vm302_vm0, %v289_v6  ;;  %503 = vmatpush.bf16.msra.mxu2 %v499_v8 }
  0x8f   : > { %v318_v9 = vpop.f32.mrf.mxu0 }
  0x90   : > { %v319_v11 = vadd.f32 %v512_v10, %v318_v9 }
  0x92   : > { %v328_v14 = vmax.f32 %v319_v11, 0.0 }
  0x96   : > { %v323_v12 = vpop.f32.mrf.mxu3 }
  0x97   : > { %v320_v13 = vpop.f32.mrf.mxu0  ;;  %v324_v18 = vadd.f32 %v512_v10, %v323_v12 }
  0x98   : > { %v321_v15 = vadd.f32 %v512_v10, %v320_v13 }
  0x99   : > { %v330_v21 = vmax.f32 %v324_v18, 0.0 }
  0x9a   : > { %v329_v16 = vmax.f32 %v321_v15, 0.0 }
  0x9c   : > { %v332_v17 = vpack.c.bf16 %v329_v16, %v328_v14 }
  0x9e   : > { %v325_v19 = vpop.f32.mrf.mxu3  ;;  %494 = vmatmul.msk.bf16.vlgmr.msra.gmra.mxu1 %vm354_vm1, %v332_v17 }
  0x9f   : > { %v326_v20 = vadd.f32 %v512_v10, %v325_v19 }
  0xa1   : > { %v331_v22 = vmax.f32 %v326_v20, 0.0 }
  0xa3   : > { %v333_v23 = vpack.c.bf16 %v331_v22, %v330_v21 }
  0xa5   : > { %495 = vmatmul.msk.bf16.vlgmr.msra.gmra.mxu2 %vm354_vm1, %v333_v23 }
 0x11b   : > { %v370_v25 = vpop.f32.mrf.mxu1 }
 0x11c   : > { %v371_v26 = vadd.f32 %v513_v24, %v370_v25 }
 0x11e   : > { %v380_v28 = vmax.f32 %v371_v26, 0.0 }
 0x120   : > { %v388_v29 = vmul.f32 %v514_v27, %v380_v28 }
 0x122   : > { %v392_v30 = vsel %vm354_vm1, %v388_v29, 0.0 }
 0x123   : > { %v372_v31 = vpop.f32.mrf.mxu1  ;;  %393 = vadd.xlane.f32.xlu0 %v392_v30 }
 0x124   : > { %v373_v32 = vadd.f32 %v513_v24, %v372_v31 }
 0x126   : > { %v381_v33 = vmax.f32 %v373_v32, 0.0 }
 0x128   : > { %v375_v34 = vpop.f32.mrf.mxu2  ;;  %v389_v35 = vmul.f32 %v514_v27, %v381_v33 }
 0x129   : > { %v376_v36 = vadd.f32 %v513_v24, %v375_v34 }
 0x12a   : > { %v395_v37 = vsel %vm354_vm1, %v389_v35, 0.0 }
 0x12b   : > { %v382_v38 = vmax.f32 %v376_v36, 0.0  ;;  %396 = vadd.xlane.f32.xlu0 %v395_v37 }
 0x12d   : > { %v390_v39 = vmul.f32 %v514_v27, %v382_v38 }
 0x12f   : > { %v398_v40 = vsel %vm354_vm1, %v390_v39, 0.0 }
 0x130   : > { %v377_v41 = vpop.f32.mrf.mxu2  ;;  %399 = vadd.xlane.f32.xlu1 %v398_v40 }
 0x131   : > { %v378_v42 = vadd.f32 %v513_v24, %v377_v41 }
 0x133   : > { %v383_v43 = vmax.f32 %v378_v42, 0.0 }
 0x135   : > { %v391_v44 = vmul.f32 %v514_v27, %v383_v43 }
 0x137   : > { %v401_v45 = vsel %vm354_vm1, %v391_v44, 0.0 }
 0x138   : > { %402 = vadd.xlane.f32.xlu1 %v401_v45 }
 0x196   : > { %v394_v47 = vpop.xlane.xlu0 %393 }
 0x197   : > { %v406_v48 = vadd.f32 %v405_v46, %v394_v47 }
 0x199   : > { %411 = vst.msk [vmem:[%s281_s24] sm:$0xff] %vm410_vm2, %v406_v48 }
 0x19e   : > { %v397_v49 = vpop.xlane.xlu0 %396 }
 0x19f   : > { %v407_v50 = vadd.f32 %v405_v46, %v397_v49 }
 0x1a1   : > { %412 = vst.msk [vmem:[%s281_s24 + $0x8] sm:$0xff] %vm410_vm2, %v407_v50 }
 0x1a3   : > { %v400_v51 = vpop.xlane.xlu1 %399 }
 0x1a4   : > { %v408_v52 = vadd.f32 %v405_v46, %v400_v51 }
 0x1a6   : > { %413 = vst.msk [vmem:[%s281_s24 + $0x10] sm:$0xff] %vm410_vm2, %v408_v52 }
 0x1ab   : > { %v403_v53 = vpop.xlane.xlu1 %402 }
 0x1ac   : > { %v409_v54 = vadd.f32 %v405_v46, %v403_v53 }
 0x1ae   : > { %414 = vst.msk [vmem:[%s281_s24 + $0x18] sm:$0xff] %vm410_vm2, %v409_v54 }
 0x1af PF: > { %s18_s26 = sadd.s32 1, %s521_s26  }
 0x1b0   : > { %p15_p4 = scmp.ge.s32.totalorder %s18_s26, 4  }
 0x1b2   :  { %17 = sbr.rel (!%p15_p4) target bundleno = 2 (0x2), region = 78 }

</bundles_post_ra>
